<compile_context>
chip_gen: v6e
topology: v6e:2x2x1
jax: 0.10.0
libtpu: 0.0.40
codegen_flags: <defaults>
</compile_context>

<pallas_src>
import jax
import jax.numpy as jnp
import numpy as np
from jax.experimental import pallas as pl
from jax.experimental.pallas import tpu as pltpu


def _tpu_budgets():
    """Per-generation (channel-block target bytes, vmem_limit_bytes)."""
    vmem_cap = 64 << 20                     # conservative default (v7x: 64 MiB/TC)
    try:
        vmem_cap = int(pltpu.get_tpu_info().vmem_capacity_bytes)
    except Exception:
        pass
    limit = min(vmem_cap * 3 // 4, 100 << 20)     # ~48 MiB on v7x, ~96 MiB on v5e/v6e
    target = max(min(limit // 5, 16 << 20), 1 << 20)
    return target, limit


def _pick_tc(C, bytes_per_channel, target_bytes, *, channel_on_sublanes,
             override=None):
    """Channel-block size.  Prefers TC == C or a divisor of C (no remainder block).

    When the channel axis is the second-minor (sublane) dim of the block
    (flattened-spatial layout), TC must be a multiple of 8 or equal to C.
    """
    if override is not None:
        tc = max(1, min(int(override), C))
    else:
        max_tc = max(1, int(target_bytes // max(1, bytes_per_channel)))
        if C <= max_tc:
            tc = C
        else:
            tc = max_tc
            for d in range(max_tc, max(1, max_tc // 2) - 1, -1):
                if C % d == 0:            # divisor of C -> no remainder block
                    tc = d
                    break
    if channel_on_sublanes and tc != C:
        tc = max(8, tc // 8 * 8)          # (8,128) rule on the sublane axis
        if tc >= C:
            tc = C
    return tc


def _conv_sigmoid_2ch(avg, mx, w_ref, K, H, W):
    """'Same'-padded KxK cross-correlation of the 2-channel [avg, max] stack
    followed by sigmoid.  w_ref: SMEM (2*K*K,) f32 ref holding the PyTorch
    (out=1, in=2, K, K) weights flattened.  avg/mx: (H, W) f32 values."""
    PAD = K // 2
    pad_cfg = ((PAD, PAD), (PAD, PAD))
    avg_p = jnp.pad(avg, pad_cfg)                       # (H + 2*PAD, W + 2*PAD)
    mx_p = jnp.pad(mx, pad_cfg)

    # K lane-shifted (H+2*PAD, W) views per map (XLU work), hoisted out of the
    # ky loop so every per-tap FMA below runs at exactly W lanes.
    cols_a = [avg_p[:, kx:kx + W] for kx in range(K)]
    cols_m = [mx_p[:, kx:kx + W] for kx in range(K)]

    acc = None
    for ky in range(K):
        row = None                                      # (H + 2*PAD, W)
        for kx in range(K):
            wa = w_ref[ky * K + kx]                     # avg-channel tap (SMEM scalar)
            wm = w_ref[K * K + ky * K + kx]             # max-channel tap
            term = wa * cols_a[kx] + wm * cols_m[kx]
            row = term if row is None else row + term
        shifted = row[ky:ky + H, :]                     # one sublane shift per ky
        acc = shifted if acc is None else acc + shifted
    return jax.nn.sigmoid(acc)


def _make_fused_kernel(C, TC, H, W, K):
    """W >= 128 path: streaming channel reduction + conv + sigmoid, one kernel."""
    n_rem = C % TC                  # channels in the (partial) last block; 0 if TC | C
    inv_c = 1.0 / C

    def kernel(w_ref, x_ref, o_ref, sum_ref, max_ref):
        c_idx = pl.program_id(1)
        last = pl.num_programs(1) - 1

        @pl.when(c_idx == 0)
        def _init():
            sum_ref[...] = jnp.zeros(sum_ref.shape, sum_ref.dtype)
            max_ref[...] = jnp.full(max_ref.shape, -jnp.inf, max_ref.dtype)

        def _accumulate(xb):                            # xb: (tc_or_rem, H, W)
            xf = xb.astype(jnp.float32)
            sum_ref[...] = sum_ref[...] + jnp.sum(xf, axis=0)
            max_ref[...] = jnp.maximum(max_ref[...], jnp.max(xf, axis=0))

        if n_rem:
            # Only the (partial) last block pays the static channel slice;
            # full blocks run the plain unmasked reduction.
            @pl.when(c_idx != last)
            def _full():
                _accumulate(x_ref[0])

            @pl.when(c_idx == last)
            def _partial():
                _accumulate(x_ref[0, :n_rem])
        else:
            _accumulate(x_ref[0])

        @pl.when(c_idx == last)
        def _finalize():
            out = _conv_sigmoid_2ch(sum_ref[...] * jnp.float32(inv_c),
                                    max_ref[...], w_ref, K, H, W)
            o_ref[0, 0] = out.astype(o_ref.dtype)

    return kernel


def _make_reduce_kernel(C, TC):
    """W < 128 path, stage 1: lane-dense channel mean/max over (TC, H*W) blocks."""
    n_rem = C % TC
    inv_c = 1.0 / C

    def kernel(x_ref, mm_ref, sum_ref, max_ref):
        c_idx = pl.program_id(1)
        last = pl.num_programs(1) - 1

        @pl.when(c_idx == 0)
        def _init():
            sum_ref[...] = jnp.zeros(sum_ref.shape, sum_ref.dtype)
            max_ref[...] = jnp.full(max_ref.shape, -jnp.inf, max_ref.dtype)

        def _accumulate(xb):                            # xb: (tc_or_rem, H*W)
            xf = xb.astype(jnp.float32)
            sum_ref[...] = sum_ref[...] + jnp.sum(xf, axis=0, keepdims=True)
            max_ref[...] = jnp.maximum(max_ref[...],
                                       jnp.max(xf, axis=0, keepdims=True))

        if n_rem:
            @pl.when(c_idx != last)
            def _full():
                _accumulate(x_ref[0])

            @pl.when(c_idx == last)
            def _partial():
                _accumulate(x_ref[0, :n_rem])
        else:
            _accumulate(x_ref[0])

        @pl.when(c_idx == last)
        def _finalize():
            mm_ref[0, 0:1] = sum_ref[...] * jnp.float32(inv_c)
            mm_ref[0, 1:2] = max_ref[...]

    return kernel


def _make_conv_kernel(K, H, W):
    """W < 128 path, stage 2: per-batch 2-channel KxK conv + sigmoid (tiny)."""
    def kernel(w_ref, mm_ref, o_ref):
        out = _conv_sigmoid_2ch(mm_ref[0, 0], mm_ref[0, 1], w_ref, K, H, W)
        o_ref[0, 0] = out.astype(o_ref.dtype)
    return kernel


def spatial_attention(x, conv_w, *, channel_block=None):
    """x: (N, C, H, W); conv_w: (1, 2, K, K).  sigmoid(conv_KxK([mean_c, max_c]))."""
    N, C, H, W = x.shape
    out_ch, in_ch, K, K2 = conv_w.shape
    assert out_ch == 1 and in_ch == 2 and K == K2 and K in (3, 7)

    itemsize = jnp.dtype(x.dtype).itemsize
    block_target, vmem_limit = _tpu_budgets()
    w_flat = conv_w.astype(jnp.float32).reshape(-1)            # (2*K*K,)
    w_spec = pl.BlockSpec(memory_space=pltpu.MemorySpace.SMEM)
    out_shape = jax.ShapeDtypeStruct((N, 1, H, W), x.dtype)

    if W >= 128:
        # ---- fused path: reduction + conv + sigmoid in one kernel ----------
        tc = _pick_tc(C, H * W * itemsize, block_target,
                      channel_on_sublanes=False, override=channel_block)
        n_cb = pl.cdiv(C, tc)
        cost = pl.CostEstimate(
            flops=3 * N * C * H * W + 4 * K * K * N * H * W,
            transcendentals=N * H * W,
            bytes_accessed=N * C * H * W * itemsize + N * H * W * itemsize)
        return pl.pallas_call(
            _make_fused_kernel(C, tc, H, W, K),
            out_shape=out_shape,
            grid=(N, n_cb),
            in_specs=[w_spec,
                      pl.BlockSpec((1, tc, H, W), lambda n, c: (n, c, 0, 0))],
            out_specs=pl.BlockSpec((1, 1, H, W), lambda n, c: (n, 0, 0, 0)),
            scratch_shapes=[pltpu.VMEM((H, W), jnp.float32),   # running sum
                            pltpu.VMEM((H, W), jnp.float32)],  # running max
            compiler_params=pltpu.CompilerParams(
                dimension_semantics=("parallel", "arbitrary"),
                vmem_limit_bytes=vmem_limit),
            cost_estimate=cost,
        )(w_flat, x)

    # ---- lane-dense path for W < 128 ----------------------------------------
    # Stage 1: flatten spatial dims (free; HBM layout unchanged) so the
    # streaming reduction runs on lane-dense (TC, H*W) blocks -> (N, 2, H*W).
    HW = H * W
    x_flat = x.reshape(N, C, HW)
    tc = _pick_tc(C, HW * itemsize, block_target,
                  channel_on_sublanes=True, override=channel_block)
    n_cb = pl.cdiv(C, tc)
    red_cost = pl.CostEstimate(
        flops=3 * N * C * HW,
        transcendentals=0,
        bytes_accessed=N * C * HW * itemsize + 2 * N * HW * 4)
    mean_max = pl.pallas_call(
        _make_reduce_kernel(C, tc),
        out_shape=jax.ShapeDtypeStruct((N, 2, HW), jnp.float32),
        grid=(N, n_cb),
        in_specs=[pl.BlockSpec((1, tc, HW), lambda n, c: (n, c, 0))],
        out_specs=pl.BlockSpec((1, 2, HW), lambda n, c: (n, 0, 0)),
        scratch_shapes=[pltpu.VMEM((1, HW), jnp.float32),      # running sum
                        pltpu.VMEM((1, HW), jnp.float32)],     # running max
        compiler_params=pltpu.CompilerParams(
            dimension_semantics=("parallel", "arbitrary"),
            vmem_limit_bytes=vmem_limit),
        cost_estimate=red_cost,
    )(x_flat)

    # Stage 2: tiny per-batch 2-channel KxK conv + sigmoid (O(4*K*K*H*W) FLOPs).
    mm = mean_max.reshape(N, 2, H, W)
    conv_cost = pl.CostEstimate(
        flops=4 * K * K * N * H * W,
        transcendentals=N * H * W,
        bytes_accessed=2 * N * H * W * 4 + N * H * W * itemsize)
    return pl.pallas_call(
        _make_conv_kernel(K, H, W),
        out_shape=out_shape,
        grid=(N,),
        in_specs=[w_spec,
                  pl.BlockSpec((1, 2, H, W), lambda n: (n, 0, 0, 0))],
        out_specs=pl.BlockSpec((1, 1, H, W), lambda n: (n, 0, 0, 0)),
        compiler_params=pltpu.CompilerParams(
            dimension_semantics=("parallel",)),
        cost_estimate=conv_cost,
    )(w_flat, mm)


def reference(x, conv_w):
    pad = conv_w.shape[-1] // 2
    xf = x.astype(jnp.float32)
    avg = jnp.mean(xf, axis=1, keepdims=True)
    mx = jnp.max(xf, axis=1, keepdims=True)
    cat = jnp.concatenate([avg, mx], axis=1)
    y = jax.lax.conv_general_dilated(
        cat, conv_w.astype(jnp.float32),
        window_strides=(1, 1), padding=((pad, pad), (pad, pad)),
        dimension_numbers=("NCHW", "OIHW", "NCHW"),
        precision=jax.lax.Precision.HIGHEST)
    return jax.nn.sigmoid(y).astype(x.dtype)


if __name__ == "__main__":
    key = jax.random.PRNGKey(0)
    kx_key, kw_key = jax.random.split(key)

    KSIZE = 7
    # Deterministic Conv2d(2, 1, 7, bias=False)-style init: U(-b, b), b = sqrt(1/fan_in)
    fan_in = 2 * KSIZE * KSIZE
    bound = float(np.sqrt(1.0 / fan_in))
    conv_w = jax.random.uniform(kw_key, (1, 2, KSIZE, KSIZE),
                                minval=-bound, maxval=bound, dtype=jnp.float32)

    cases = [
        # (shape, channel_block override)
        ((2, 4, 16, 16), None),   # lane-dense path, single channel block (TC == C)
        ((2, 12, 16, 16), 8),     # lane-dense path, multi-block + remainder slice
        ((1, 12, 8, 128), 8),     # fused path (W >= 128), multi-block + remainder
    ]
    for (shape, cb) in cases:
        N, C, H, W = shape
        x = jax.random.normal(jax.random.fold_in(kx_key, C * 1000 + W), shape,
                              dtype=jnp.float32)
        out = jax.block_until_ready(spatial_attention(x, conv_w, channel_block=cb))
        ref = jax.block_until_ready(reference(x, conv_w))
        np.testing.assert_allclose(np.asarray(out), np.asarray(ref),
                                   rtol=1e-4, atol=1e-5)
        assert out.shape == (N, 1, H, W)

    print("KERNEL_OK")
</pallas_src>

<mosaic_0001>
module attributes {stable_mosaic.version = 11 : i64} {
  func.func @kernel(%arg0: i32, %arg1: i32, %arg2: memref<1x4x256xf32, #tpu.memory_space<vmem>>, %arg3: memref<1x2x256xf32, #tpu.memory_space<vmem>>, %arg4: memref<1x256xf32, #tpu.memory_space<vmem>>, %arg5: memref<1x256xf32, #tpu.memory_space<vmem>>) attributes {dimension_semantics = [#tpu.dimension_semantics<parallel>, #tpu.dimension_semantics<arbitrary>], iteration_bounds = array<i64: 2, 1>, scalar_prefetch = 0 : i64, scratch_operands = 2 : i64, tpu.core_type = #tpu.core_type<tc>, window_params = [{transform_indices = @transform_0, window_bounds = array<i64: 1, 4, 256>}, {transform_indices = @transform_1, window_bounds = array<i64: 1, 2, 256>}]} {
    %c0_i32 = arith.constant 0 : i32
    %0 = arith.cmpi eq, %arg1, %c0_i32 : i32
    %1 = arith.extui %0 : i1 to i32
    %c0_i32_0 = arith.constant 0 : i32
    %2 = arith.cmpi ne, %1, %c0_i32_0 : i32
    scf.if %2 {
      %cst_14 = arith.constant 0.000000e+00 : f32
      %18 = vector.broadcast %cst_14 : f32 to vector<1x256xf32>
      %c0_15 = arith.constant 0 : index
      %c0_16 = arith.constant 0 : index
      %19 = vector.load %arg4[%c0_15, %c0_16] : memref<1x256xf32, #tpu.memory_space<vmem>>, vector<1x256xf32>
      tpu.vector_store %arg4[%c0_15, %c0_16], %18 {strides = array<i32>} : memref<1x256xf32, #tpu.memory_space<vmem>>, vector<1x256xf32>,
      %cst_17 = arith.constant 0xFF800000 : f32
      %20 = vector.broadcast %cst_17 : f32 to vector<1x256xf32>
      %c0_18 = arith.constant 0 : index
      %c0_19 = arith.constant 0 : index
      %21 = vector.load %arg5[%c0_18, %c0_19] : memref<1x256xf32, #tpu.memory_space<vmem>>, vector<1x256xf32>
      tpu.vector_store %arg5[%c0_18, %c0_19], %20 {strides = array<i32>} : memref<1x256xf32, #tpu.memory_space<vmem>>, vector<1x256xf32>,
    } else {
    }
    %c0 = arith.constant 0 : index
    %c0_1 = arith.constant 0 : index
    %c0_2 = arith.constant 0 : index
    %3 = vector.load %arg2[%c0, %c0_1, %c0_2] : memref<1x4x256xf32, #tpu.memory_space<vmem>>, vector<1x4x256xf32>
    %4 = vector.shape_cast %3 : vector<1x4x256xf32> to vector<4x256xf32>
    %c0_3 = arith.constant 0 : index
    %c0_4 = arith.constant 0 : index
    %5 = vector.load %arg4[%c0_3, %c0_4] : memref<1x256xf32, #tpu.memory_space<vmem>>, vector<1x256xf32>
    %cst = arith.constant dense<0.000000e+00> : vector<256xf32>
    %6 = vector.multi_reduction <add>, %4, %cst [0] : vector<4x256xf32> to vector<256xf32>
    %7 = vector.shape_cast %6 : vector<256xf32> to vector<1x256xf32>
    %8 = arith.addf %5, %7 : vector<1x256xf32>
    %c0_5 = arith.constant 0 : index
    %c0_6 = arith.constant 0 : index
    %9 = vector.load %arg4[%c0_5, %c0_6] : memref<1x256xf32, #tpu.memory_space<vmem>>, vector<1x256xf32>
    tpu.vector_store %arg4[%c0_5, %c0_6], %8 {strides = array<i32>} : memref<1x256xf32, #tpu.memory_space<vmem>>, vector<1x256xf32>,
    %c0_7 = arith.constant 0 : index
    %c0_8 = arith.constant 0 : index
    %10 = vector.load %arg5[%c0_7, %c0_8] : memref<1x256xf32, #tpu.memory_space<vmem>>, vector<1x256xf32>
    %cst_9 = arith.constant dense<0xFF800000> : vector<256xf32>
    %11 = vector.multi_reduction <maximumf>, %4, %cst_9 [0] : vector<4x256xf32> to vector<256xf32>
    %12 = vector.shape_cast %11 : vector<256xf32> to vector<1x256xf32>
    %13 = arith.maximumf %10, %12 : vector<1x256xf32>
    %c0_10 = arith.constant 0 : index
    %c0_11 = arith.constant 0 : index
    %14 = vector.load %arg5[%c0_10, %c0_11] : memref<1x256xf32, #tpu.memory_space<vmem>>, vector<1x256xf32>
    tpu.vector_store %arg5[%c0_10, %c0_11], %13 {strides = array<i32>} : memref<1x256xf32, #tpu.memory_space<vmem>>, vector<1x256xf32>,
    %c0_i32_12 = arith.constant 0 : i32
    %15 = arith.cmpi eq, %arg1, %c0_i32_12 : i32
    %16 = arith.extui %15 : i1 to i32
    %c0_i32_13 = arith.constant 0 : i32
    %17 = arith.cmpi ne, %16, %c0_i32_13 : i32
    scf.if %17 {
      %c0_14 = arith.constant 0 : index
      %c0_15 = arith.constant 0 : index
      %18 = vector.load %arg4[%c0_14, %c0_15] : memref<1x256xf32, #tpu.memory_space<vmem>>, vector<1x256xf32>
      %cst_16 = arith.constant 2.500000e-01 : f32
      %19 = vector.broadcast %cst_16 : f32 to vector<1x256xf32>
      %20 = arith.mulf %18, %19 : vector<1x256xf32>
      %c0_17 = arith.constant 0 : index
      %c0_18 = arith.constant 0 : index
      %c0_19 = arith.constant 0 : index
      %21 = vector.load %arg3[%c0_17, %c0_18, %c0_19] : memref<1x2x256xf32, #tpu.memory_space<vmem>>, vector<1x1x256xf32>
      %22 = vector.shape_cast %21 : vector<1x1x256xf32> to vector<1x256xf32>
      %23 = vector.shape_cast %20 : vector<1x256xf32> to vector<1x1x256xf32>
      tpu.vector_store %arg3[%c0_17, %c0_18, %c0_19], %23 {strides = array<i32>} : memref<1x2x256xf32, #tpu.memory_space<vmem>>, vector<1x1x256xf32>,
      %c0_20 = arith.constant 0 : index
      %c0_21 = arith.constant 0 : index
      %24 = vector.load %arg5[%c0_20, %c0_21] : memref<1x256xf32, #tpu.memory_space<vmem>>, vector<1x256xf32>
      %c0_22 = arith.constant 0 : index
      %c1 = arith.constant 1 : index
      %c0_23 = arith.constant 0 : index
      %25 = vector.load %arg3[%c0_22, %c1, %c0_23] : memref<1x2x256xf32, #tpu.memory_space<vmem>>, vector<1x1x256xf32>
      %26 = vector.shape_cast %25 : vector<1x1x256xf32> to vector<1x256xf32>
      %27 = vector.shape_cast %24 : vector<1x256xf32> to vector<1x1x256xf32>
      tpu.vector_store %arg3[%c0_22, %c1, %c0_23], %27 {strides = array<i32>} : memref<1x2x256xf32, #tpu.memory_space<vmem>>, vector<1x1x256xf32>,
    } else {
    }
    return
  }
  func.func @transform_0(%arg0: i32, %arg1: i32) -> (i32, i32, i32) {
    %c0_i32 = arith.constant 0 : i32
    %c0_i32_0 = arith.constant 0 : i32
    return %arg0, %arg1, %c0_i32 : i32, i32, i32
  }
  func.func @transform_1(%arg0: i32, %arg1: i32) -> (i32, i32, i32) {
    %c0_i32 = arith.constant 0 : i32
    %c0_i32_0 = arith.constant 0 : i32
    %c0_i32_1 = arith.constant 0 : i32
    return %arg0, %c0_i32, %c0_i32_0 : i32, i32, i32
  }
}

</mosaic_0001>

<bundles_post_ra>
// kernel: tpu_custom_call.1
= control target key start
LH: loop header
LB: loop body
LE: loop exit
PB: predicated region body
PF: predicated region fallthrough
CT: control target
= control target key end

     0   :  { %6 = vsyncpa [#allocation5], 0  ;;  %s709_s0 = inlined_call_operand.hbm [shape: f32[2,4,256], index: 0, kind: input, shape index: {}]   ;;  %s710_s1 = inlined_call_operand.hbm [shape: f32[2,2,256], index: 1, kind: output, shape index: {}]  }
   0x1   :  { %8 = vsyncpa [#allocation5 + $0x1], 0 }
   0x2   :  { %9 = vsyncpa [#allocation6], 0 }
   0x3   :  { %11 = vsyncpa [#allocation6 + $0x1], 0  ;;  %s552_s6 = smov 0   ;;  %s554_s7 = smov 0  }
   0x4   :  { %s556_s8 = smov 0   ;;  %s558_s9 = smov 0  }
   0x5   :  { %s560_s10 = smov 0   ;;  %s562_s11 = smov 0  }
   0x6 LB: > { %s343_s12 = sadd.s32 4294967295, %s535_s11   ;;  %s344_s13 = sadd.s32 4294967294, %s535_s11   ;;  %s535_s11 = sphi %s562_s11, %s17_s11   ;;  %s531_s10 = sphi %s560_s10, %s724_s10   ;;  %s527_s9 = sphi %s558_s9, %s723_s9   ;;  %s523_s8 = sphi %s556_s8, %s722_s8   ;;  %s519_s7 = sphi %s554_s7, %s721_s7   ;;  %s515_s6 = sphi %s552_s6, %s720_s6  }
   0x7   : > { %s29_s14 = sadd.s32 1, %s531_s10  ;;  %s38_s15 = sadd.s32 1, %s523_s8 }
   0x8   : > { %p31_p0 = scmp.ge.s32.totalorder %s29_s14, 2  ;;  %p45_p1 = scmp.ne.s32.totalorder %s523_s8, %s519_s7 }
   0x9   : > { %p46_p2 = scmp.eq.s32.totalorder %s535_s11, 0  ;;  %p51_p3 = scmp.ne.s32.totalorder %s519_s7, %s515_s6 }
   0xa   : > { %s726_s14 = smov (%p31_p0, %s29_s14), 0  ;;  %p52_p5 = scmp.eq.s32.totalorder %s343_s12, 0 }
   0xb   : > { %p593_p4 = por %p46_p2, %p45_p1  ;;  %s33_s17 = ssub.s32 %s531_s10, %s726_s14 }
   0xc   : > { %p75_p6 = scmp.eq.s32.totalorder %s343_s12, 1  ;;  %p36_p7 = scmp.eq.s32.totalorder %s33_s17, 0 }
   0xd   : > { %p599_p8 = por %p52_p5, %p51_p3  ;;  %p81_p10 = scmp.eq.s32.totalorder %s344_s13, 1 }
   0xe   : > { %p603_p9 = por %p75_p6, %p45_p1  ;;  %p373_p13 = scmp.lt.s32.totalorder %s535_s11, 2 }
   0xf   : > { %s608_s20 = scalar_select %p36_p7, %s523_s8, %s38_s15  }
  0x10   : > { %p610_p11 = por %p81_p10, %p51_p3  ;;  %s101_s22 = sand.u32 1, %s523_s8  }
  0x11   : > { %s347_s23 = sshll.u32 %s101_s22, 3  ;;  %s359_s24 = sshll.u32 %s531_s10, 7 }
  0x12   : > { %s714_s21 = scalar_select %p610_p11, 1, 0 }
  0x13   : > { %s113_s27 = scalar_lea.hbm %s709_s0, %s359_s24  ;;  %s105_s28 = scalar_lea.vmem [#allocation4], %s347_s23 }
  0x14   : > { %s115_s29 = sshll.u32 %s105_s28, 4  ;;  %p623_p0 = pnand %p373_p13, %p593_p4  ;;  %s116_s29 = int_to_ptr.vmem [resolvable:$true] %s115_s29 }
  0x15   : > { %p350_p1 = scmp.ge.s32.totalorder %s535_s11, 1  ;;  %p120_p2 = scmp.lt.s32.totalorder %s535_s11, 3 }
  0x16   : > { %s102_s2 = scalar_lea.sflag [#allocation5], %s101_s22  ;;  %p429_p3 = pneg %p623_p0 }
  0x17   : > { %s440_s3 = scalar_lea.vmem %s116_s29, 128  ;;  %s537_s4 = smov [#allocation4]  }
  0x18   : > { %p441_p5 = scmp.ne.s32.totalorder %s116_s29, %s440_s3  ;;  %s445_s5 = sshll.u32 %s537_s4, 4  ;;  %s446_s5 = int_to_ptr.vmem [resolvable:$false] %s445_s5 }
  0x19   : > { %s447_s12 = scalar_lea.vmem %s446_s5, 256  ;;  %p448_p10 = scmp.lt.s32.totalorder %s116_s29, %s446_s5 }
  0x1a   : > { %p443_p6 = pnand %p441_p5, %p429_p3  ;;  %p449_p12 = scmp.lt.s32.totalorder %s447_s12, %s440_s3 }
  0x1c   : > { %p444_p7 = pneg %p443_p6  ;;  %p450_p4 = por %p449_p12, %p448_p10 }
  0x1e   : > { %p451_p13 = pnand %p450_p4, %p444_p7 }
  0x20   : > { %454 = shalt.err (!%p451_p13)
}
  0x21   : > { %368 = dma.hbm_to_vmem [thread:$0]  (!%p623_p0), %s113_s27, 128, %s116_s29, %s102_s2  }
  0x22   : > { %p121_p11 = pnand %p350_p1, %p120_p2 }
  0x23   : > { %s638_s13 = sand.u32 (!%p121_p11), 1, %s519_s7  }
  0x24   : > { %124 = sbr.rel (%p121_p11) target bundleno = 89 (0x59), region = 24  ;;  %s351_s15 = sshll.u32 (!%p121_p11), %s638_s13, 3 }
  0x25   : > { %s127_s16 = scalar_lea.sflag (!%p121_p11), [#allocation5], %s638_s13  ;;  %s130_s17 = scalar_lea.vmem (!%p121_p11), [#allocation4], %s351_s15 }
  0x29   : > { %506 = dma.done.wait (%p599_p8), %s127_s16, 128  }
  0x2a   : > { %508 = vsyncadd (%p599_p8), %s127_s16, 4294967168  ;;  %v153_v0 = vlaneseq  ;;  %v538_v2 = vmov 0.0   ;;  %v539_v3 = vmov -inf   ;;  %vm164_vm1 = vcmask 1043456   ;;  %v159_v4 = vld [vmem:[%s130_s17] sm:$0xff]  ;;  %s352_s18 = sshll.u32 %s638_s13, 2 }
  0x2b   : > { %v162_v5 = vcombine.high %v159_v4, %v159_v4  ;;  %v165_v6 = vsel %vm164_vm1, %v159_v4, 0.0  ;;  %v204_v7 = vsel %vm164_vm1, %v159_v4, -inf  ;;  %v540_v16 = vmov 1966171168   ;;  %s148_s22 = scalar_lea.vmem [#allocation7], %s352_s18  ;;  %s360_s24 = sshll.u32 %s527_s9, 6 }
  0x2c   : > { %vm646_vm0 = vcmp.lt.s32.totalorder %v153_v0, 256  ;;  %v166_v8 = vrot.slane %v165_v6, 4  ;;  %v205_v9 = vrot.slane %v204_v7, 4  ;;  %v183_v17 = vunpack.c.l.s4 %v540_v16  ;;  %s262_s23 = sshll.u32 %s148_s22, 4  ;;  %s260_s27 = scalar_lea.hbm %s710_s1, %s360_s24  ;;  %s660_s23 = int_to_ptr.vmem [resolvable:$true] %s262_s23 }
  0x2d   : > { %157 = vst.msk [vmem:[#allocation2] sm:$0x3] %vm646_vm0, %v538_v2  ;;  %158 = vst.msk [vmem:[#allocation3] sm:$0x3] %vm646_vm0, %v539_v3  ;;  %v172_v10 = vsel %vm164_vm1, %v162_v5, 0.0  ;;  %v211_v11 = vsel %vm164_vm1, %v162_v5, -inf }
  0x2e   : > { %v167_v12 = vadd.f32 %v166_v8, %v165_v6  ;;  %v173_v13 = vrot.slane %v172_v10, 4  ;;  %v206_v14 = vmax.f32 %v204_v7, %v205_v9  ;;  %v212_v15 = vrot.slane %v211_v11, 4  ;;  %s248_s28 = scalar_lea.sflag [#allocation6], %s638_s13  ;;  %s455_s9 = scalar_lea.vmem %s660_s23, 64 }
  0x2f   : > { %v184_v26 = vunpack.c.0.s8 %v183_v17  ;;  %v186_v27 = vshrl.u32 %v153_v0, 7  ;;  %p456_p8 = scmp.ne.s32.totalorder %s660_s23, %s455_s9  ;;  %s541_s29 = smov [#allocation7]  }
  0x30   : > { %v168_v18 = vrot.slane %v167_v12, 2  ;;  %v174_v19 = vadd.f32 %v173_v13, %v172_v10  ;;  %v207_v20 = vrot.slane %v206_v14, 2  ;;  %v213_v21 = vmax.f32 %v211_v11, %v212_v15  ;;  %s459_s30 = sshll.u32 %s541_s29, 4  ;;  %s460_s30 = int_to_ptr.vmem [resolvable:$false] %s459_s30 }
  0x31   : > { %v187_v36 = vsub.s32 %v184_v26, %v186_v27  ;;  %p457_p11 = pnand %p456_p8, %p603_p9  ;;  %s461_s2 = scalar_lea.vmem %s460_s30, 128 }
  0x32   : > { %v169_v22 = vadd.f32 %v168_v18, %v167_v12  ;;  %v175_v23 = vrot.slane %v174_v19, 2  ;;  %v208_v24 = vmax.f32 %v206_v14, %v207_v20  ;;  %v214_v25 = vrot.slane %v213_v21, 2  ;;  %p462_p0 = scmp.lt.s32.totalorder %s660_s23, %s460_s30  ;;  %p463_p1 = scmp.lt.s32.totalorder %s461_s2, %s455_s9 }
  0x33   : > { %p458_p12 = pneg %p457_p11 }
  0x34   : > { %v170_v28 = vrot.slane %v169_v22, 1  ;;  %v176_v29 = vadd.f32 %v175_v23, %v174_v19  ;;  %v209_v30 = vrot.slane %v208_v24, 1  ;;  %v215_v31 = vmax.f32 %v213_v21, %v214_v25  ;;  %v160_v43 = vld [vmem:[#allocation2] sm:$0x3]  ;;  %v203_v44 = vld [vmem:[#allocation3] sm:$0x3]  ;;  %p464_p2 = por %p463_p1, %p462_p0 }
  0x36   : > { %v171_v32 = vadd.f32 %v170_v28, %v169_v22  ;;  %v177_v33 = vrot.slane %v176_v29, 1  ;;  %v210_v34 = vmax.f32 %v208_v24, %v209_v30  ;;  %v216_v35 = vrot.slane %v215_v31, 1  ;;  %p465_p3 = pnand %p464_p2, %p458_p12 }
  0x38   : > { %v178_v37 = vadd.f32 %v177_v33, %v176_v29  ;;  %v217_v38 = vmax.f32 %v215_v31, %v216_v35 }
  0x3a   : > { %v181_v39 = vcombine.low %v171_v32, %v178_v37  ;;  %v220_v40 = vcombine.low %v210_v34, %v217_v38 }
  0x3c   : > { %v188_v41 = vrot.slane %v181_v39, %v187_v36  ;;  %v227_v42 = vrot.slane %v220_v40, %v187_v36 }
  0x3e   : > { %v195_v45 = vrot.slane %v188_v41, %v187_v36  ;;  %v234_v46 = vrot.slane %v227_v42, %v187_v36 }
  0x40   : > { %v197_v47 = vadd.f32 %v195_v45, %v160_v43  ;;  %v236_v48 = vmax.f32 %v203_v44, %v234_v46 }
  0x42   : > { %202 = vst.msk [vmem:[#allocation2] sm:$0x3] %vm646_vm0, %v197_v47  ;;  %237 = vst.msk [vmem:[#allocation3] sm:$0x3] %vm646_vm0, %v236_v48 }
  0x49   : > { %v241_v49 = vld [vmem:[#allocation2] sm:$0x3]  ;;  %v244_v50 = vld [vmem:[#allocation3] sm:$0x3] }
  0x4a   : > { %v242_v51 = vmul.f32 0.25, %v241_v49  ;;  %353 = vst.msk [vmem:[%s148_s22 + $0x1] ss:$2 sm:$0x3] %vm646_vm0, %v244_v50 }
  0x4c   : > { %243 = vst.msk [vmem:[%s148_s22] ss:$2 sm:$0x3] %vm646_vm0, %v242_v51 }
  0x4d   : > { %468 = shalt.err (!%p465_p3)
}
  0x4e   : > { %s469_s3 = scalar_lea.hbm %s260_s27, 64  ;;  %s473_s12 = scalar_lea.hbm %s710_s1, 128 }
  0x4f   : > { %p470_p5 = scmp.ne.s32.totalorder %s260_s27, %s469_s3  ;;  %p474_p10 = scmp.lt.s32.totalorder %s260_s27, %s710_s1 }
  0x50   : > { %p475_p4 = scmp.lt.s32.totalorder %s473_s12, %s469_s3 }
  0x51   : > { %p471_p6 = pnand %p470_p5, %p603_p9 }
  0x52   : > { %p476_p13 = por %p475_p4, %p474_p10 }
  0x53   : > { %p472_p7 = pneg %p471_p6 }
  0x55   : > { %p477_p8 = pnand %p476_p13, %p472_p7 }
  0x57   : > { %480 = shalt.err (!%p477_p8)
}
  0x58   : > { %363 = dma.vmem_to_hbm [thread:$0]  (%p603_p9), %s660_s23, 64, %s260_s27, %s248_s28  }
  0x59 PF: > { %s274_s16 = sand.u32 1, %s515_s6   ;;  %p718_p11 = scmp.ne.s32.totalorder %s714_s21, 0 }
  0x5a   : > { %p719_p12 = scmp.ge.s32.totalorder %s535_s11, 2  ;;  %s275_s17 = scalar_lea.sflag [#allocation6], %s274_s16 }
  0x5c   : > { %p370_p0 = pnand %p719_p12, %p718_p11 }
  0x5e   : > { %p371_p1 = pneg %p370_p0 }
  0x60   : > { %510 = dma.done.wait (%p371_p1), %s275_s17, 64  }
  0x61   : > { %512 = vsyncadd (%p371_p1), %s275_s17, 4294967232  ;;  %s17_s11 = sadd.s32 1, %s535_s11   ;;  %s720_s6 = smov %s519_s7 }
  0x62   : > { %p14_p2 = scmp.ge.s32.totalorder %s17_s11, 4   ;;  %s721_s7 = smov %s523_s8 }
  0x63   : > { %s722_s8 = smov %s608_s20  ;;  %s723_s9 = smov %s531_s10 }
  0x64   : > { %s724_s10 = smov %s726_s14  ;;  %16 = sbr.rel (!%p14_p2) target bundleno = 6 (0x6), region = 78 }
  0x69   :  { %280 = vsyncpa [#allocation5], 1 }
  0x6a   :  { %282 = vsyncpa [#allocation5 + $0x1], 1 }
  0x6b   :  { %283 = vsyncpa [#allocation6], 1 }
  0x6c   :  { %285 = vsyncpa [#allocation6 + $0x1], 1 }

</bundles_post_ra>
